<compile_context>
chip_gen: v6e
topology: v6e:2x2x1
jax: 0.10.0
libtpu: 0.0.40
codegen_flags: <defaults>
</compile_context>

<pallas_src>
import jax
import jax.numpy as jnp
from jax.experimental import pallas as pl
from jax.experimental.pallas import tpu as pltpu


def _copy_kernel(x_ref, o_ref):
    # Identical block shapes / index maps for input and output -> plain block
    # copy, no in-kernel slicing.
    o_ref[...] = x_ref[...]


def _round_up(v: int, m: int) -> int:
    return ((v + m - 1) // m) * m


def chomp1d(
    x: jax.Array,
    chomp_size: int,
    *,
    block_budget_bytes: int = 2 * 1024 * 1024,
    force_pallas: bool = False,
) -> jax.Array:
    """Pallas equivalent of Chomp1d.forward for x of shape (N, C, L)."""
    n, c, l = x.shape
    if chomp_size == 0:
        return x
    assert 0 < chomp_size < l, "chomp_size must be in [0, L)"
    l_out = l - chomp_size
    itemsize = jnp.dtype(x.dtype).itemsize

    # Fast path: short rows / tiny totals are better handled by an XLA slice
    # (descriptor overhead + (8,128) padding would dominate a Pallas launch).
    out_bytes = n * c * l_out * itemsize
    if not force_pallas and (l_out * itemsize < 512 or out_bytes < (1 << 20)):
        return x[:, :, :l_out]

    # Metadata-only flatten of the leading dims: (N, C, L) -> (N*C, L).
    r = n * c
    x2d = x.reshape(r, l)

    # Dtype-aware minimum sublane multiple: 8 (f32), 16 (bf16), 32 (i8/fp8).
    sub = max(8, 32 // itemsize)

    # Lane tile: prefer the full chomped row (rounded up to 128); only tile L
    # when a single padded row exceeds the per-block byte budget.
    tl_full = _round_up(l_out, 128)
    if sub * tl_full * itemsize <= block_budget_bytes:
        tl = tl_full
        rows_fit = block_budget_bytes // (tl * itemsize)
        tr = max(sub, (rows_fit // sub) * sub)
        tr = min(tr, _round_up(r, sub))
    else:
        tr = sub
        lanes_fit = block_budget_bytes // (tr * itemsize)
        tl = max(128, (lanes_fit // 128) * 128)
        tl = min(tl, tl_full)

    # Give the row axis >= 2 tiles when possible (v7x 2-TensorCore sharding).
    if pl.cdiv(r, tr) < 2 and r > sub:
        tr = max(sub, _round_up(pl.cdiv(r, 2), sub))

    grid = (pl.cdiv(r, tr), pl.cdiv(l_out, tl))
    idx = lambda ri, li: (ri, li)  # same map for input and output

    out2d = pl.pallas_call(
        _copy_kernel,
        out_shape=jax.ShapeDtypeStruct((r, l_out), x.dtype),
        grid_spec=pltpu.PrefetchScalarGridSpec(
            num_scalar_prefetch=0,
            grid=grid,
            # (pl.Buffered(3) on the input spec is an optional extra buffer to
            # hide strided-read jitter; default double buffering kept here.)
            in_specs=[pl.BlockSpec((tr, tl), idx)],
            out_specs=pl.BlockSpec((tr, tl), idx),
        ),
        compiler_params=pltpu.CompilerParams(
            # Every grid step writes a disjoint output tile -> all parallel.
            dimension_semantics=("parallel", "parallel"),
        ),
    )(x2d)

    return out2d.reshape(n, c, l_out)


if __name__ == "__main__":
    key = jax.random.PRNGKey(0)

    # Small shapes consistent with the module: (batch=2, channels=4, length=16).
    N, C, L = 2, 4, 16
    chomp_size = 3
    x = jax.random.normal(key, (N, C, L), dtype=jnp.float32)
    ref = x[:, :, :-chomp_size]

    # 1) Pallas path on the demo shape (single padded block, masked stores).
    out = jax.block_until_ready(chomp1d(x, chomp_size, force_pallas=True))
    assert out.shape == (N, C, L - chomp_size), out.shape
    assert jnp.array_equal(out, ref), "Pallas Chomp1d mismatch vs reference"

    # 2) Natural call: tiny input takes the XLA-slice fast path.
    out_fast = jax.block_until_ready(chomp1d(x, chomp_size))
    assert jnp.array_equal(out_fast, ref), "fast-path mismatch"

    # 3) Multi-row-tile path: full-row lane tile, 2 row tiles, masked lanes.
    key2 = jax.random.PRNGKey(1)
    x2 = jax.random.normal(key2, (2, 16, 384), dtype=jnp.float32)
    out2 = jax.block_until_ready(chomp1d(x2, 3, force_pallas=True))
    assert jnp.array_equal(out2, x2[:, :, :-3]), "row-tiled path mismatch"

    # 4) Lane-tiled path (tiny budget forces tl < L_out; masked final tile
    #    with L_out % tl != 0 and reads into the chomped tail).
    out3 = jax.block_until_ready(
        chomp1d(x2, 3, force_pallas=True, block_budget_bytes=8192))
    assert jnp.array_equal(out3, x2[:, :, :-3]), "lane-tiled path mismatch"

    print("KERNEL_OK")
</pallas_src>

<mosaic_0001>
module attributes {stable_mosaic.version = 11 : i64} {
  func.func @_copy_kernel(%arg0: i32, %arg1: i32, %arg2: memref<8x128xf32, #tpu.memory_space<vmem>>, %arg3: memref<8x128xf32, #tpu.memory_space<vmem>>) attributes {dimension_semantics = [#tpu.dimension_semantics<parallel>, #tpu.dimension_semantics<parallel>], iteration_bounds = array<i64: 1, 1>, scalar_prefetch = 0 : i64, scratch_operands = 0 : i64, tpu.core_type = #tpu.core_type<tc>, window_params = [{transform_indices = @transform_0, window_bounds = array<i64: 8, 128>}, {transform_indices = @transform_1, window_bounds = array<i64: 8, 128>}]} {
    %c0 = arith.constant 0 : index
    %c0_0 = arith.constant 0 : index
    %0 = vector.load %arg2[%c0, %c0_0] : memref<8x128xf32, #tpu.memory_space<vmem>>, vector<8x128xf32>
    %c0_1 = arith.constant 0 : index
    %c0_2 = arith.constant 0 : index
    %1 = vector.load %arg3[%c0_1, %c0_2] : memref<8x128xf32, #tpu.memory_space<vmem>>, vector<8x128xf32>
    tpu.vector_store %arg3[%c0_1, %c0_2], %0 {strides = array<i32>} : memref<8x128xf32, #tpu.memory_space<vmem>>, vector<8x128xf32>,
    return
  }
  func.func @transform_0(%arg0: i32, %arg1: i32) -> (i32, i32) {
    %c0_i32 = arith.constant 0 : i32
    return %arg0, %arg1 : i32, i32
  }
  func.func @transform_1(%arg0: i32, %arg1: i32) -> (i32, i32) {
    %c0_i32 = arith.constant 0 : i32
    return %arg0, %arg1 : i32, i32
  }
}

</mosaic_0001>

<bundles_post_ra>
// kernel: tpu_custom_call.1
= control target key start
LH: loop header
LB: loop body
LE: loop exit
PB: predicated region body
PF: predicated region fallthrough
CT: control target
= control target key end

     0   :  { %6 = vsyncpa [#allocation3], 0  ;;  %s102_s0 = inlined_call_operand.hbm [shape: f32[8,16], index: 0, kind: input, shape index: {}]   ;;  %s103_s1 = inlined_call_operand.hbm [shape: f32[8,13], index: 1, kind: output, shape index: {}]  }
   0x1   :  { %7 = vsyncpa [#allocation4], 0  ;;  %s84_s6 = smov [#allocation2]  }
   0x2   :  { %s14_s7 = sshll.u32 %s84_s6, 4  ;;  %s15_s7 = int_to_ptr.vmem [resolvable:$true] %s14_s7 }
   0x3   :  { %s48_s8 = scalar_lea.vmem %s15_s7, 128  ;;  %p53_p1 = scmp.lt.s32.totalorder %s15_s7, %s15_s7 }
   0x4   :  { %p49_p0 = scmp.ne.s32.totalorder %s15_s7, %s48_s8  ;;  %p54_p2 = scmp.lt.s32.totalorder %s48_s8, %s48_s8 }
   0x6   :  { %p55_p3 = por %p54_p2, %p53_p1 }
   0x8   :  { %p56_p4 = pnand %p55_p3, %p49_p0 }
   0xa   :  { %59 = shalt.err (!%p56_p4)
}
   0xb   :  { %17 = dma.hbm_to_vmem [thread:$0]  %s102_s0, 128, %s15_s7, [#allocation3]  }
   0xc   :  { %80 = dma.done.wait [#allocation3], 128  }
   0xd   :  { %81 = vsyncadd [#allocation3], 4294967168  ;;  %s85_s11 = smov [#allocation5]   ;;  %v21_v0 = vld [vmem:[#allocation2] sm:$0xff] }
   0xe   :  { %s29_s12 = sshll.u32 %s85_s11, 4  ;;  %22 = vst [vmem:[#allocation5] sm:$0xff] %v21_v0  ;;  %s30_s12 = int_to_ptr.vmem [resolvable:$true] %s29_s12 }
   0xf   :  { %s60_s13 = scalar_lea.vmem %s30_s12, 128  ;;  %p65_p6 = scmp.lt.s32.totalorder %s30_s12, %s30_s12 }
  0x10   :  { %p61_p5 = scmp.ne.s32.totalorder %s30_s12, %s60_s13  ;;  %p66_p7 = scmp.lt.s32.totalorder %s60_s13, %s60_s13 }
  0x12   :  { %p67_p8 = por %p66_p7, %p65_p6 }
  0x14   :  { %p68_p9 = pnand %p67_p8, %p61_p5 }
  0x16   :  { %71 = shalt.err (!%p68_p9)
}
  0x17   :  { %32 = dma.vmem_to_hbm [thread:$0]  %s30_s12, 128, %s103_s1, [#allocation4]  }
  0x18   :  { %82 = dma.done.wait [#allocation4], 128  }
  0x19   :  { %83 = vsyncadd [#allocation4], 4294967168 }
  0x1a   :  { %36 = vsyncpa [#allocation3], 1 }
  0x1b   :  { %37 = vsyncpa [#allocation4], 1 }

</bundles_post_ra>
